<compile_context>
chip_gen: v7x
topology: tpu7x:2x2x1
jax: 0.10.0
libtpu: 0.0.40
codegen_flags: <defaults>
</compile_context>

<pallas_src>
import jax
import jax.numpy as jnp
import numpy as np
from jax import lax
from jax.experimental import pallas as pl
from jax.experimental.pallas import tpu as pltpu


# ------------------------------ fused kernel ---------------------------------
def _fused_up_conv_kernel(x_ref, skip_ref, bup_ref, w1_ref, b1_ref,
                          w2_ref, b2_ref, out_ref):
    """One batch image per grid step; all intermediates stay in VMEM."""
    H = x_ref.shape[1]            # input rows
    H2 = skip_ref.shape[1]        # upsampled rows (= 2*H)
    Ho1, Ho2 = H2 - 2, H2 - 4     # rows after conv1 / conv2 (valid 3x3)

    # --- ConvTranspose2d(k=2, s=2): one banded matmul per output-row parity,
    #     then a single stack+reshape interleaves the rows (no per-row stores).
    x = x_ref[0]                                                     # (H, W*Cin) bf16
    u_even = jnp.dot(x, bup_ref[0], preferred_element_type=jnp.float32)
    u_odd = jnp.dot(x, bup_ref[1], preferred_element_type=jnp.float32)
    up = jnp.stack([u_even, u_odd], axis=1).reshape(H2, u_even.shape[1])
    up_bf = up.astype(jnp.bfloat16)                                  # (H2, W2*Cu)

    # --- channel concat == lane concat (skip lanes first, matching PyTorch
    #     torch.cat([downsample_x, up], dim=1) -> weight K ordering on host).
    cat = jnp.concatenate([skip_ref[0], up_bf], axis=-1)             # (H2, W2*Cin) bf16

    # --- conv1 (3x3 valid) + bias + ReLU: 3 banded matmuls (one per ky).
    acc1 = jnp.dot(cat[0:Ho1, :], w1_ref[0], preferred_element_type=jnp.float32)
    for ky in (1, 2):
        acc1 += jnp.dot(cat[ky:ky + Ho1, :], w1_ref[ky],
                        preferred_element_type=jnp.float32)
    a1 = jnp.maximum(acc1 + b1_ref[...], 0.0)                        # (Ho1, Wo1*Co) f32
    a1_bf = a1.astype(jnp.bfloat16)

    # --- conv2 (3x3 valid) + bias + ReLU.
    acc2 = jnp.dot(a1_bf[0:Ho2, :], w2_ref[0], preferred_element_type=jnp.float32)
    for ky in (1, 2):
        acc2 += jnp.dot(a1_bf[ky:ky + Ho2, :], w2_ref[ky],
                        preferred_element_type=jnp.float32)
    a2 = jnp.maximum(acc2 + b2_ref[...], 0.0)                        # (Ho2, Wo2*Co)
    out_ref[0] = a2.astype(out_ref.dtype)


# --------------------------- host-side weight packing -------------------------
def pack_params(params, H, W):
    """One-time repack of PyTorch-layout weights into the banded matmul
    operands used by the fused kernel (shapes depend on the spatial size)."""
    up_w = np.asarray(params["up_w"], np.float32)     # (Cin, Cu, 2, 2)
    up_b = np.asarray(params["up_b"], np.float32)     # (Cu,)
    w1 = np.asarray(params["conv1_w"], np.float32)    # (Co, Cin, 3, 3)
    b1 = np.asarray(params["conv1_b"], np.float32)
    w2 = np.asarray(params["conv2_w"], np.float32)    # (Co, Co, 3, 3)
    b2 = np.asarray(params["conv2_b"], np.float32)

    Cin, Cu = up_w.shape[0], up_w.shape[1]
    Co = w1.shape[0]
    Cs = w1.shape[1] - Cu                             # skip channels
    H2, W2 = 2 * H, 2 * W
    Wo1, Wo2 = W2 - 2, W2 - 4

    # ConvTranspose2d(k=2,s=2) as two (W*Cin, W2*Cu) block matrices (one per
    # output-row parity a):  up[2i+a, 2j+b, o] = sum_c x[i, j, c] * up_w[c,o,a,b]
    bup = np.zeros((2, W * Cin, W2 * Cu), np.float32)
    for a in range(2):
        for j in range(W):
            for b in range(2):
                bup[a, j * Cin:(j + 1) * Cin,
                    (2 * j + b) * Cu:(2 * j + b + 1) * Cu] = up_w[:, :, a, b]

    # 3x3 conv along x as banded matrices (one per kernel row ky):
    #   out[y, xo*Co + o] += sum_{xi,c} in[y+ky, xi*C + c] * A[ky, xi*C+c, xo*Co+o]
    # conv1 input lanes are [skip lanes | up lanes] (matching the in-kernel
    # lane concat), so its K axis is the concatenation of the two bands.
    a1s = np.zeros((3, W2 * Cs, Wo1 * Co), np.float32)   # conv1, skip channels
    a1u = np.zeros((3, W2 * Cu, Wo1 * Co), np.float32)   # conv1, upsampled channels
    for ky in range(3):
        for xo in range(Wo1):
            for kx in range(3):
                xi = xo + kx
                a1s[ky, xi * Cs:(xi + 1) * Cs, xo * Co:(xo + 1) * Co] = w1[:, :Cs, ky, kx].T
                a1u[ky, xi * Cu:(xi + 1) * Cu, xo * Co:(xo + 1) * Co] = w1[:, Cs:, ky, kx].T
    w1cat = np.concatenate([a1s, a1u], axis=1)            # (3, W2*Cin, Wo1*Co)

    a2w = np.zeros((3, Wo1 * Co, Wo2 * Co), np.float32)   # conv2
    for ky in range(3):
        for xo in range(Wo2):
            for kx in range(3):
                xi = xo + kx
                a2w[ky, xi * Co:(xi + 1) * Co, xo * Co:(xo + 1) * Co] = w2[:, :, ky, kx].T

    # Fold the transposed-conv bias into conv1's bias: a spatially-constant
    # per-channel offset through a valid conv is a constant per output channel.
    b1_eff = b1 + np.einsum("ocyx,c->o", w1[:, Cs:, :, :], up_b)
    b1_row = np.tile(b1_eff, Wo1).reshape(1, Wo1 * Co)
    b2_row = np.tile(b2, Wo2).reshape(1, Wo2 * Co)

    return {
        "bup": jnp.asarray(bup, jnp.bfloat16),
        "w1": jnp.asarray(w1cat, jnp.bfloat16),
        "a2w": jnp.asarray(a2w, jnp.bfloat16),
        "b1row": jnp.asarray(b1_row, jnp.float32),
        "b2row": jnp.asarray(b2_row, jnp.float32),
    }


# ------------------------------ forward wrapper -------------------------------
@jax.jit
def conv_block_upsample_padding_forward(packed, x_nchw, skip_nchw):
    N, Cin, H, W = x_nchw.shape
    _, Cs, H2, W2 = skip_nchw.shape
    Co = packed["b2row"].shape[1] // (W2 - 4)
    Cu = packed["bup"].shape[2] // W2
    Ho1, Wo1 = H2 - 2, W2 - 2
    Ho2, Wo2 = H2 - 4, W2 - 4

    # Cheap layout plumbing: NCHW -> (N, y, x*C + c) bf16 rows (lane-dense).
    x2d = jnp.transpose(x_nchw, (0, 2, 3, 1)).reshape(N, H, W * Cin).astype(jnp.bfloat16)
    skip2d = (jnp.transpose(skip_nchw, (0, 2, 3, 1))
              .reshape(N, H2, W2 * Cs).astype(jnp.bfloat16))

    operands = (x2d, skip2d, packed["bup"], packed["w1"], packed["b1row"],
                packed["a2w"], packed["b2row"])
    flops = 2 * N * (2 * H * (W * Cin) * (W2 * Cu)
                     + 3 * Ho1 * (W2 * Cin) * (Wo1 * Co)
                     + 3 * Ho2 * (Wo1 * Co) * (Wo2 * Co))
    bytes_accessed = (sum(int(op.size) * op.dtype.itemsize for op in operands)
                      + N * Ho2 * Wo2 * Co * 4)

    out2d = pl.pallas_call(
        _fused_up_conv_kernel,
        out_shape=jax.ShapeDtypeStruct((N, Ho2, Wo2 * Co), jnp.float32),
        grid=(N,),
        in_specs=[
            pl.BlockSpec((1, H, W * Cin), lambda n: (n, 0, 0)),
            pl.BlockSpec((1, H2, W2 * Cs), lambda n: (n, 0, 0)),
            pl.BlockSpec((2, W * Cin, W2 * Cu), lambda n: (0, 0, 0)),
            pl.BlockSpec((3, W2 * Cin, Wo1 * Co), lambda n: (0, 0, 0)),
            pl.BlockSpec((1, Wo1 * Co), lambda n: (0, 0)),
            pl.BlockSpec((3, Wo1 * Co, Wo2 * Co), lambda n: (0, 0, 0)),
            pl.BlockSpec((1, Wo2 * Co), lambda n: (0, 0)),
        ],
        out_specs=pl.BlockSpec((1, Ho2, Wo2 * Co), lambda n: (n, 0, 0)),
        compiler_params=pltpu.CompilerParams(dimension_semantics=("parallel",)),
        cost_estimate=pl.CostEstimate(flops=flops, transcendentals=0,
                                      bytes_accessed=bytes_accessed),
    )(*operands)

    # (N, Ho2, Wo2*Co) -> NCHW
    return out2d.reshape(N, Ho2, Wo2, Co).transpose(0, 3, 1, 2)


# ----------------------------- pure-JAX reference -----------------------------
def reference_forward(params, x_nchw, skip_nchw):
    x = jnp.transpose(x_nchw, (0, 2, 3, 1))
    skip = jnp.transpose(skip_nchw, (0, 2, 3, 1))
    N, H, W, Cin = x.shape
    Cout = params["up_w"].shape[1]
    t = jnp.einsum("nijc,coab->nijabo", x, params["up_w"],
                   precision=lax.Precision.HIGHEST)
    up = t.transpose(0, 1, 3, 2, 4, 5).reshape(N, 2 * H, 2 * W, Cout)
    up = up + params["up_b"]
    cat = jnp.concatenate([skip, up], axis=-1)

    def conv_relu(x_nhwc, w, b):
        y = lax.conv_general_dilated(
            x_nhwc, w, window_strides=(1, 1), padding="VALID",
            dimension_numbers=("NHWC", "OIHW", "NHWC"),
            precision=lax.Precision.HIGHEST)
        return jnp.maximum(y + b, 0.0)

    a1 = conv_relu(cat, params["conv1_w"], params["conv1_b"])
    a2 = conv_relu(a1, params["conv2_w"], params["conv2_b"])
    return jnp.transpose(a2, (0, 3, 1, 2))


# ----------------------------------- main --------------------------------------
if __name__ == "__main__":
    in_channels, out_channels = 8, 4
    N, H, W = 2, 8, 8
    skip_channels = in_channels - out_channels      # concat must total in_channels

    key = jax.random.PRNGKey(0)
    ks = jax.random.split(key, 8)

    def init(k, shape, fan_in):
        return (jax.random.normal(k, shape, jnp.float32) / np.sqrt(fan_in)).astype(jnp.float32)

    params = {
        # nn.ConvTranspose2d(in_channels, out_channels, 2, stride=2): (Cin, Cout, 2, 2)
        "up_w": init(ks[0], (in_channels, out_channels, 2, 2), in_channels * 4),
        "up_b": init(ks[1], (out_channels,), in_channels * 4),
        # conv1: nn.Conv2d(in_channels, out_channels, 3): (Cout, Cin, 3, 3)
        "conv1_w": init(ks[2], (out_channels, in_channels, 3, 3), in_channels * 9),
        "conv1_b": init(ks[3], (out_channels,), in_channels * 9),
        # conv2: nn.Conv2d(out_channels, out_channels, 3)
        "conv2_w": init(ks[4], (out_channels, out_channels, 3, 3), out_channels * 9),
        "conv2_b": init(ks[5], (out_channels,), out_channels * 9),
    }

    x = jax.random.normal(ks[6], (N, in_channels, H, W), jnp.float32)
    downsample_x = jax.random.normal(ks[7], (N, skip_channels, 2 * H, 2 * W), jnp.float32)

    packed = pack_params(params, H, W)
    out = conv_block_upsample_padding_forward(packed, x, downsample_x)
    out = jax.block_until_ready(out)
    assert out.shape == (N, out_channels, 2 * H - 4, 2 * W - 4), out.shape

    ref = jax.block_until_ready(reference_forward(params, x, downsample_x))
    np.testing.assert_allclose(np.asarray(out), np.asarray(ref), rtol=2e-2, atol=2e-2)

    print("KERNEL_OK")
</pallas_src>

<mosaic_0001>
module attributes {stable_mosaic.version = 11 : i64} {
  func.func @_fused_up_conv_kernel(%arg0: i32, %arg1: memref<1x8x64xbf16, #tpu.memory_space<vmem>>, %arg2: memref<1x16x64xbf16, #tpu.memory_space<vmem>>, %arg3: memref<2x64x64xbf16, #tpu.memory_space<vmem>>, %arg4: memref<3x128x56xbf16, #tpu.memory_space<vmem>>, %arg5: memref<1x56xf32, #tpu.memory_space<vmem>>, %arg6: memref<3x56x48xbf16, #tpu.memory_space<vmem>>, %arg7: memref<1x48xf32, #tpu.memory_space<vmem>>, %arg8: memref<1x12x48xf32, #tpu.memory_space<vmem>>) attributes {dimension_semantics = [#tpu.dimension_semantics<parallel>], iteration_bounds = array<i64: 2>, scalar_prefetch = 0 : i64, scratch_operands = 0 : i64, tpu.core_type = #tpu.core_type<tc>, window_params = [{transform_indices = @transform_0, window_bounds = array<i64: 1, 8, 64>}, {transform_indices = @transform_1, window_bounds = array<i64: 1, 16, 64>}, {pipeline_mode = #tpu.pipeline_mode<synchronous>, transform_indices = @transform_2, window_bounds = array<i64: 2, 64, 64>}, {pipeline_mode = #tpu.pipeline_mode<synchronous>, transform_indices = @transform_3, window_bounds = array<i64: 3, 128, 56>}, {pipeline_mode = #tpu.pipeline_mode<synchronous>, transform_indices = @transform_4, window_bounds = array<i64: 1, 56>}, {pipeline_mode = #tpu.pipeline_mode<synchronous>, transform_indices = @transform_5, window_bounds = array<i64: 3, 56, 48>}, {pipeline_mode = #tpu.pipeline_mode<synchronous>, transform_indices = @transform_6, window_bounds = array<i64: 1, 48>}, {transform_indices = @transform_7, window_bounds = array<i64: 1, 12, 48>}]} {
    %c0 = arith.constant 0 : index
    %c0_0 = arith.constant 0 : index
    %c0_1 = arith.constant 0 : index
    %0 = vector.load %arg1[%c0, %c0_0, %c0_1] : memref<1x8x64xbf16, #tpu.memory_space<vmem>>, vector<1x8x64xbf16>
    %1 = vector.shape_cast %0 : vector<1x8x64xbf16> to vector<8x64xbf16>
    %c0_2 = arith.constant 0 : index
    %c0_3 = arith.constant 0 : index
    %c0_4 = arith.constant 0 : index
    %2 = vector.load %arg3[%c0_2, %c0_3, %c0_4] : memref<2x64x64xbf16, #tpu.memory_space<vmem>>, vector<1x64x64xbf16>
    %3 = vector.shape_cast %2 : vector<1x64x64xbf16> to vector<64x64xbf16>
    %cst = arith.constant dense<0.000000e+00> : vector<8x64xf32>
    %4 = tpu.matmul %1, %3, %cst {dimension_numbers = #tpu.dot_dimension_numbers<[1], [0], [0], [1], [0, 0, 1, 1], [], []>} : vector<8x64xbf16>, vector<64x64xbf16>, vector<8x64xf32> -> vector<8x64xf32>
    %c1 = arith.constant 1 : index
    %c0_5 = arith.constant 0 : index
    %c0_6 = arith.constant 0 : index
    %5 = vector.load %arg3[%c1, %c0_5, %c0_6] : memref<2x64x64xbf16, #tpu.memory_space<vmem>>, vector<1x64x64xbf16>
    %6 = vector.shape_cast %5 : vector<1x64x64xbf16> to vector<64x64xbf16>
    %cst_7 = arith.constant dense<0.000000e+00> : vector<8x64xf32>
    %7 = tpu.matmul %1, %6, %cst_7 {dimension_numbers = #tpu.dot_dimension_numbers<[1], [0], [0], [1], [0, 0, 1, 1], [], []>} : vector<8x64xbf16>, vector<64x64xbf16>, vector<8x64xf32> -> vector<8x64xf32>
    %8 = vector.shape_cast %4 : vector<8x64xf32> to vector<8x1x64xf32>
    %9 = vector.shape_cast %7 : vector<8x64xf32> to vector<8x1x64xf32>
    %10 = tpu.concatenate %8, %9 in 1 : vector<8x1x64xf32>, vector<8x1x64xf32> -> vector<8x2x64xf32>
    %11 = vector.shape_cast %10 : vector<8x2x64xf32> to vector<16x64xf32>
    %12 = arith.truncf %11 : vector<16x64xf32> to vector<16x64xbf16>
    %c0_8 = arith.constant 0 : index
    %c0_9 = arith.constant 0 : index
    %c0_10 = arith.constant 0 : index
    %13 = vector.load %arg2[%c0_8, %c0_9, %c0_10] : memref<1x16x64xbf16, #tpu.memory_space<vmem>>, vector<1x16x64xbf16>
    %14 = vector.shape_cast %13 : vector<1x16x64xbf16> to vector<16x64xbf16>
    %15 = tpu.concatenate %14, %12 in 1 : vector<16x64xbf16>, vector<16x64xbf16> -> vector<16x128xbf16>
    %16 = vector.extract_strided_slice %15 {offsets = [0, 0], sizes = [14, 128], strides = [1, 1]} : vector<16x128xbf16> to vector<14x128xbf16>
    %c0_11 = arith.constant 0 : index
    %c0_12 = arith.constant 0 : index
    %c0_13 = arith.constant 0 : index
    %17 = vector.load %arg4[%c0_11, %c0_12, %c0_13] : memref<3x128x56xbf16, #tpu.memory_space<vmem>>, vector<1x128x56xbf16>
    %18 = vector.shape_cast %17 : vector<1x128x56xbf16> to vector<128x56xbf16>
    %cst_14 = arith.constant dense<0.000000e+00> : vector<14x56xf32>
    %19 = tpu.matmul %16, %18, %cst_14 {dimension_numbers = #tpu.dot_dimension_numbers<[1], [0], [0], [1], [0, 0, 1, 1], [], []>} : vector<14x128xbf16>, vector<128x56xbf16>, vector<14x56xf32> -> vector<14x56xf32>
    %20 = vector.extract_strided_slice %15 {offsets = [1, 0], sizes = [14, 128], strides = [1, 1]} : vector<16x128xbf16> to vector<14x128xbf16>
    %c1_15 = arith.constant 1 : index
    %c0_16 = arith.constant 0 : index
    %c0_17 = arith.constant 0 : index
    %21 = vector.load %arg4[%c1_15, %c0_16, %c0_17] : memref<3x128x56xbf16, #tpu.memory_space<vmem>>, vector<1x128x56xbf16>
    %22 = vector.shape_cast %21 : vector<1x128x56xbf16> to vector<128x56xbf16>
    %cst_18 = arith.constant dense<0.000000e+00> : vector<14x56xf32>
    %23 = tpu.matmul %20, %22, %cst_18 {dimension_numbers = #tpu.dot_dimension_numbers<[1], [0], [0], [1], [0, 0, 1, 1], [], []>} : vector<14x128xbf16>, vector<128x56xbf16>, vector<14x56xf32> -> vector<14x56xf32>
    %24 = arith.addf %19, %23 : vector<14x56xf32>
    %25 = vector.extract_strided_slice %15 {offsets = [2, 0], sizes = [14, 128], strides = [1, 1]} : vector<16x128xbf16> to vector<14x128xbf16>
    %c2 = arith.constant 2 : index
    %c0_19 = arith.constant 0 : index
    %c0_20 = arith.constant 0 : index
    %26 = vector.load %arg4[%c2, %c0_19, %c0_20] : memref<3x128x56xbf16, #tpu.memory_space<vmem>>, vector<1x128x56xbf16>
    %27 = vector.shape_cast %26 : vector<1x128x56xbf16> to vector<128x56xbf16>
    %cst_21 = arith.constant dense<0.000000e+00> : vector<14x56xf32>
    %28 = tpu.matmul %25, %27, %cst_21 {dimension_numbers = #tpu.dot_dimension_numbers<[1], [0], [0], [1], [0, 0, 1, 1], [], []>} : vector<14x128xbf16>, vector<128x56xbf16>, vector<14x56xf32> -> vector<14x56xf32>
    %29 = arith.addf %24, %28 : vector<14x56xf32>
    %c0_22 = arith.constant 0 : index
    %c0_23 = arith.constant 0 : index
    %30 = vector.load %arg5[%c0_22, %c0_23] : memref<1x56xf32, #tpu.memory_space<vmem>>, vector<1x56xf32>
    %31 = vector.broadcast %30 : vector<1x56xf32> to vector<14x56xf32>
    %32 = arith.addf %29, %31 : vector<14x56xf32>
    %cst_24 = arith.constant 0.000000e+00 : f32
    %33 = vector.broadcast %cst_24 : f32 to vector<14x56xf32>
    %34 = arith.maximumf %32, %33 : vector<14x56xf32>
    %35 = arith.truncf %34 : vector<14x56xf32> to vector<14x56xbf16>
    %36 = vector.extract_strided_slice %35 {offsets = [0, 0], sizes = [12, 56], strides = [1, 1]} : vector<14x56xbf16> to vector<12x56xbf16>
    %c0_25 = arith.constant 0 : index
    %c0_26 = arith.constant 0 : index
    %c0_27 = arith.constant 0 : index
    %37 = vector.load %arg6[%c0_25, %c0_26, %c0_27] : memref<3x56x48xbf16, #tpu.memory_space<vmem>>, vector<1x56x48xbf16>
    %38 = vector.shape_cast %37 : vector<1x56x48xbf16> to vector<56x48xbf16>
    %cst_28 = arith.constant dense<0.000000e+00> : vector<12x48xf32>
    %39 = tpu.matmul %36, %38, %cst_28 {dimension_numbers = #tpu.dot_dimension_numbers<[1], [0], [0], [1], [0, 0, 1, 1], [], []>} : vector<12x56xbf16>, vector<56x48xbf16>, vector<12x48xf32> -> vector<12x48xf32>
    %40 = vector.extract_strided_slice %35 {offsets = [1, 0], sizes = [12, 56], strides = [1, 1]} : vector<14x56xbf16> to vector<12x56xbf16>
    %c1_29 = arith.constant 1 : index
    %c0_30 = arith.constant 0 : index
    %c0_31 = arith.constant 0 : index
    %41 = vector.load %arg6[%c1_29, %c0_30, %c0_31] : memref<3x56x48xbf16, #tpu.memory_space<vmem>>, vector<1x56x48xbf16>
    %42 = vector.shape_cast %41 : vector<1x56x48xbf16> to vector<56x48xbf16>
    %cst_32 = arith.constant dense<0.000000e+00> : vector<12x48xf32>
    %43 = tpu.matmul %40, %42, %cst_32 {dimension_numbers = #tpu.dot_dimension_numbers<[1], [0], [0], [1], [0, 0, 1, 1], [], []>} : vector<12x56xbf16>, vector<56x48xbf16>, vector<12x48xf32> -> vector<12x48xf32>
    %44 = arith.addf %39, %43 : vector<12x48xf32>
    %45 = vector.extract_strided_slice %35 {offsets = [2, 0], sizes = [12, 56], strides = [1, 1]} : vector<14x56xbf16> to vector<12x56xbf16>
    %c2_33 = arith.constant 2 : index
    %c0_34 = arith.constant 0 : index
    %c0_35 = arith.constant 0 : index
    %46 = vector.load %arg6[%c2_33, %c0_34, %c0_35] : memref<3x56x48xbf16, #tpu.memory_space<vmem>>, vector<1x56x48xbf16>
    %47 = vector.shape_cast %46 : vector<1x56x48xbf16> to vector<56x48xbf16>
    %cst_36 = arith.constant dense<0.000000e+00> : vector<12x48xf32>
    %48 = tpu.matmul %45, %47, %cst_36 {dimension_numbers = #tpu.dot_dimension_numbers<[1], [0], [0], [1], [0, 0, 1, 1], [], []>} : vector<12x56xbf16>, vector<56x48xbf16>, vector<12x48xf32> -> vector<12x48xf32>
    %49 = arith.addf %44, %48 : vector<12x48xf32>
    %c0_37 = arith.constant 0 : index
    %c0_38 = arith.constant 0 : index
    %50 = vector.load %arg7[%c0_37, %c0_38] : memref<1x48xf32, #tpu.memory_space<vmem>>, vector<1x48xf32>
    %51 = vector.broadcast %50 : vector<1x48xf32> to vector<12x48xf32>
    %52 = arith.addf %49, %51 : vector<12x48xf32>
    %cst_39 = arith.constant 0.000000e+00 : f32
    %53 = vector.broadcast %cst_39 : f32 to vector<12x48xf32>
    %54 = arith.maximumf %52, %53 : vector<12x48xf32>
    %c0_40 = arith.constant 0 : index
    %c0_41 = arith.constant 0 : index
    %c0_42 = arith.constant 0 : index
    %55 = vector.load %arg8[%c0_40, %c0_41, %c0_42] : memref<1x12x48xf32, #tpu.memory_space<vmem>>, vector<1x12x48xf32>
    %56 = vector.shape_cast %55 : vector<1x12x48xf32> to vector<12x48xf32>
    %57 = vector.shape_cast %54 : vector<12x48xf32> to vector<1x12x48xf32>
    tpu.vector_store %arg8[%c0_40, %c0_41, %c0_42], %57 {strides = array<i32>} : memref<1x12x48xf32, #tpu.memory_space<vmem>>, vector<1x12x48xf32>,
    return
  }
  func.func @transform_0(%arg0: i32) -> (i32, i32, i32) {
    %c0_i32 = arith.constant 0 : i32
    %c0_i32_0 = arith.constant 0 : i32
    %c0_i32_1 = arith.constant 0 : i32
    return %arg0, %c0_i32, %c0_i32_0 : i32, i32, i32
  }
  func.func @transform_1(%arg0: i32) -> (i32, i32, i32) {
    %c0_i32 = arith.constant 0 : i32
    %c0_i32_0 = arith.constant 0 : i32
    %c0_i32_1 = arith.constant 0 : i32
    return %arg0, %c0_i32, %c0_i32_0 : i32, i32, i32
  }
  func.func @transform_2(%arg0: i32) -> (i32, i32, i32) {
    %c0_i32 = arith.constant 0 : i32
    %c0_i32_0 = arith.constant 0 : i32
    %c0_i32_1 = arith.constant 0 : i32
    %c0_i32_2 = arith.constant 0 : i32
    return %c0_i32, %c0_i32_0, %c0_i32_1 : i32, i32, i32
  }
  func.func @transform_3(%arg0: i32) -> (i32, i32, i32) {
    %c0_i32 = arith.constant 0 : i32
    %c0_i32_0 = arith.constant 0 : i32
    %c0_i32_1 = arith.constant 0 : i32
    %c0_i32_2 = arith.constant 0 : i32
    return %c0_i32, %c0_i32_0, %c0_i32_1 : i32, i32, i32
  }
  func.func @transform_4(%arg0: i32) -> (i32, i32) {
    %c0_i32 = arith.constant 0 : i32
    %c0_i32_0 = arith.constant 0 : i32
    %c0_i32_1 = arith.constant 0 : i32
    return %c0_i32, %c0_i32_0 : i32, i32
  }
  func.func @transform_5(%arg0: i32) -> (i32, i32, i32) {
    %c0_i32 = arith.constant 0 : i32
    %c0_i32_0 = arith.constant 0 : i32
    %c0_i32_1 = arith.constant 0 : i32
    %c0_i32_2 = arith.constant 0 : i32
    return %c0_i32, %c0_i32_0, %c0_i32_1 : i32, i32, i32
  }
  func.func @transform_6(%arg0: i32) -> (i32, i32) {
    %c0_i32 = arith.constant 0 : i32
    %c0_i32_0 = arith.constant 0 : i32
    %c0_i32_1 = arith.constant 0 : i32
    return %c0_i32, %c0_i32_0 : i32, i32
  }
  func.func @transform_7(%arg0: i32) -> (i32, i32, i32) {
    %c0_i32 = arith.constant 0 : i32
    %c0_i32_0 = arith.constant 0 : i32
    %c0_i32_1 = arith.constant 0 : i32
    return %arg0, %c0_i32, %c0_i32_0 : i32, i32, i32
  }
}

</mosaic_0001>

<bundles_post_ra>
// kernel: conv_block_upsample_padding_forward.1
= control target key start
LH: loop header
LB: loop body
LE: loop exit
PB: predicated region body
PF: predicated region fallthrough
CT: control target
= control target key end

     0   :  { %s1728_s24 = smov 0   ;;  %s1971_s0 = inlined_call_operand.vmem [shape: bf16[2,8,64], index: 0, kind: input, shape index: {}]   ;;  %s1972_s1 = inlined_call_operand.vmem [shape: bf16[2,16,64], index: 1, kind: input, shape index: {}]   ;;  %s1973_s2 = inlined_call_operand.vmem [shape: bf16[2,64,64], index: 2, kind: input, shape index: {}]   ;;  %s1974_s3 = inlined_call_operand.vmem [shape: bf16[3,128,56], index: 3, kind: input, shape index: {}]   ;;  %s1975_s4 = inlined_call_operand.vmem [shape: f32[1,56], index: 4, kind: input, shape index: {}]   ;;  %s1976_s5 = inlined_call_operand.vmem [shape: bf16[3,56,48], index: 5, kind: input, shape index: {}]   ;;  %s1977_s6 = inlined_call_operand.vmem [shape: f32[1,48], index: 6, kind: input, shape index: {}]   ;;  %s1978_s7 = inlined_call_operand.vmem [shape: f32[2,12,48], index: 7, kind: output, shape index: {}]  }
   0x1 LB: > { %s1325_s25 = sadd.s32 4294967295, %s1681_s24   ;;  %p1329_p0 = scmp.ge.s32.totalorder %s1681_s24, 1  ;;  %s1681_s24 = sphi %s1728_s24, %s17_s24  }
   0x2   : > { %p246_p1 = scmp.lt.s32.totalorder %s1681_s24, 3 }
   0x4   : > { %p247_p2 = pnand %p1329_p0, %p246_p1 }
   0x5   : > { %v1630_v0 = vld [vmem:[%s1973_s2] sm:$0xff] (!%p247_p2)   ;;  %v1683_v1 = vmov (!%p247_p2), 0.0   ;;  %v1632_v3 = vld [vmem:[%s1973_s2 + $0x8] sm:$0xff] (!%p247_p2)   ;;  %vm1684_vm0 = vmmov (!%p247_p2), 0   ;;  %p282_p3 = scmp.lt.s32.totalorder (!%p247_p2), %s1325_s25, 1  ;;  %v1634_v5 = vld [vmem:[%s1973_s2 + $0x10] sm:$0xff] (!%p247_p2)   ;;  %v452_v26 = vlaneseq (!%p247_p2) }
   0x6   : > { %250 = sbr.rel (%p247_p2) target bundleno = 877 (0x36d), region = 48  ;;  %1497 = vmatprep.subr.bf16.mxu0 (!%p247_p2), %v1683_v1  ;;  %1509 = vmatprep.subr.bf16.mxu1 (!%p247_p2), %v1683_v1  ;;  %v1631_v2 = vld [vmem:[%s1973_s2 + $0x20] sm:$0xff] (!%p247_p2)   ;;  %v1633_v4 = vld [vmem:[%s1973_s2 + $0x28] sm:$0xff] (!%p247_p2)   ;;  %v1635_v6 = vld [vmem:[%s1973_s2 + $0x30] sm:$0xff] (!%p247_p2)   ;;  %vm330_vm1 = vcmask (!%p247_p2), 523264   ;;  %vm595_vm2 = vcmask (!%p247_p2), 1040384  }
   0x7   : > { %1498 = vmatpush3.bf16.msra.mxu0 (!%p247_p2), %v1630_v0  ;;  %1505 = vmatprep.mubr.msk.bf16.mxu0 (!%p247_p2), %vm1684_vm0, %v1683_v1  ;;  %v1636_v7 = vld [vmem:[%s1973_s2 + $0x18] sm:$0xff] (!%p247_p2)   ;;  %v1638_v10 = vld [vmem:[%s1974_s3] sm:$0xff] (!%p247_p2)   ;;  %v1639_v12 = vld [vmem:[%s1974_s3 + $0x8] sm:$0xff] (!%p247_p2)   ;;  %v1685_v24 = vmov (!%p247_p2), 1966171168   ;;  %v453_v28 = vshrl.u32 (!%p247_p2), %v452_v26, 7 }
   0x8   : > { %1510 = vmatpush3.bf16.msra.mxu1 (!%p247_p2), %v1631_v2  ;;  %1499 = vmatprep.subr.bf16.mxu0 (!%p247_p2), %v1683_v1  ;;  %v1637_v8 = vld [vmem:[%s1973_s2 + $0x38] sm:$0xff] (!%p247_p2)   ;;  %v1640_v11 = vld [vmem:[%s1974_s3 + $0x40] sm:$0xff] (!%p247_p2)   ;;  %v1642_v13 = vld [vmem:[%s1974_s3 + $0x48] sm:$0xff] (!%p247_p2)   ;;  %v450_v25 = vunpack.c.l.s4 (!%p247_p2), %v1685_v24  ;;  %v1686_v31 = vmov (!%p247_p2), 1983009808   ;;  %s1687_s18 = smov (!%p247_p2), 64  }
   0x9   : > { %1511 = vmatprep.subr.bf16.mxu1 (!%p247_p2), %v1683_v1  ;;  %1517 = vmatprep.mubr.msk.bf16.mxu1 (!%p247_p2), %vm1684_vm0, %v1683_v1  ;;  %v1641_v14 = vld [vmem:[%s1974_s3 + $0x10] sm:$0xff] (!%p247_p2)   ;;  %v1643_v16 = vld [vmem:[%s1974_s3 + $0x18] sm:$0xff] (!%p247_p2)   ;;  %v1645_v18 = vld [vmem:[%s1974_s3 + $0x20] sm:$0xff] (!%p247_p2)   ;;  %v615_v32 = vunpack.c.l.s4 (!%p247_p2), %v1686_v31  ;;  %v557_v39 = vsub.s32 (!%p247_p2), 0, %v453_v28  ;;  %vm1051_vm3 = vcmask (!%p247_p2), 1043456   ;;  %vm1047_vm4 = vcmask (!%p247_p2), 457728  }
   0xa   : > { %v1644_v15 = vld [vmem:[%s1974_s3 + $0x50] sm:$0xff] (!%p247_p2)   ;;  %v1646_v17 = vld [vmem:[%s1974_s3 + $0x58] sm:$0xff] (!%p247_p2)   ;;  %v1648_v19 = vld [vmem:[%s1974_s3 + $0x60] sm:$0xff] (!%p247_p2)   ;;  %v451_v27 = vunpack.c.0.s8 (!%p247_p2), %v450_v25  ;;  %vm1254_vm5 = vcmask (!%p247_p2), 392192   ;;  %vm1256_vm6 = vcmask (!%p247_p2), 388096  }
   0xb   : > { %1500 = vmatpush3.bf16.msra.mxu0 (!%p247_p2), %v1632_v3  ;;  %v1647_v20 = vld [vmem:[%s1974_s3 + $0x28] sm:$0xff] (!%p247_p2)   ;;  %v1649_v22 = vld [vmem:[%s1974_s3 + $0x30] sm:$0xff] (!%p247_p2)   ;;  %v1651_v23 = vld [vmem:[%s1974_s3 + $0x38] sm:$0xff] (!%p247_p2)   ;;  %v616_v51 = vunpack.c.0.s8 (!%p247_p2), %v615_v32 }
   0xc   : > { %1512 = vmatpush3.bf16.msra.mxu1 (!%p247_p2), %v1633_v4  ;;  %1501 = vmatprep.subr.bf16.mxu0 (!%p247_p2), %v1683_v1  ;;  %v1650_v21 = vld [vmem:[%s1974_s3 + $0x68] sm:$0xff] (!%p247_p2)   ;;  %v454_v29 = vsub.s32 (!%p247_p2), %v451_v27, %v453_v28  ;;  %v1654_v25 = vld [vmem:[%s1974_s3 + $0x78] sm:$0xff] (!%p247_p2)  }
   0xd   : > { %s1980_s25 = smov (!%p282_p3, %s1325_s25), 1  ;;  %1513 = vmatprep.subr.bf16.mxu1 %v1683_v1 }
   0xe   : > { %s1330_s13 = sshll.u32 %s1980_s25, 2  ;;  %s1443_s29 = sshll.u32 %s1980_s25, 3 }
   0xf   : > { %s285_s22 = scalar_lea.vmem %s1971_s0, %s1330_s13  ;;  %1502 = vmatpush3.bf16.msra.mxu0 %v1634_v5  ;;  %s1804_s13 = scalar_lea.vmem %s1972_s1, %s1443_s29 }
  0x10   : > { %1514 = vmatpush3.bf16.msra.mxu1 %v1635_v6  ;;  %1503 = vmatprep.subr.bf16.mxu0 %v1683_v1  ;;  %v297_v9 = vld [vmem:[%s285_s22] sm:$0xf]  ;;  %s1444_s21 = sshll.u32 %s1980_s25, 4 }
  0x11   : > { %1515 = vmatprep.subr.bf16.mxu1 %v1683_v1  ;;  %s295_s23 = scalar_lea.vmem %s1978_s7, %s1444_s21 }
  0x13   : > { %1504 = vmatpush3.bf16.msra.mxu0 %v1636_v7 }
  0x14   : > { %1516 = vmatpush3.bf16.msra.mxu1 %v1637_v8  ;;  %1521 = vmatprep.subr.bf16.mxu0 %v1683_v1 }
  0x15   : > { %1541 = vmatprep.subr.bf16.mxu1 %v1683_v1 }
  0x16   : > { %1506 = vmatmul.mubr.msk.bf16.vlgmr.msra.gmra.mrb[0].mxu0 %vm330_vm1, %v297_v9 }
  0x17   : > { %1518 = vmatmul.mubr.msk.bf16.vlgmr.msra.gmra.mrb[0].mxu1 %vm330_vm1, %v297_v9  ;;  %1537 = vmatprep.mubr.msk.bf16.mxu0 %vm1684_vm0, %v1683_v1  ;;  %v1653_v9 = vld [vmem:[%s1974_s3 + $0x70] sm:$0xff]  }
  0x18   : > { %1557 = vmatprep.mubr.msk.bf16.mxu1 %vm1684_vm0, %v1683_v1  ;;  %1542 = vmatpush3.bf16.msra.mxu1 %v1638_v10 }
  0x19   : > { %1522 = vmatpush3.bf16.msra.mxu0 %v1640_v11  ;;  %1543 = vmatprep.subr.bf16.mxu1 %v1683_v1 }
  0x1a   : > { %1523 = vmatprep.subr.bf16.mxu0 %v1683_v1 }
  0x1c   : > { %1544 = vmatpush3.bf16.msra.mxu1 %v1639_v12 }
  0x1d   : > { %1524 = vmatpush3.bf16.msra.mxu0 %v1642_v13  ;;  %1545 = vmatprep.subr.bf16.mxu1 %v1683_v1 }
  0x1e   : > { %1525 = vmatprep.subr.bf16.mxu0 %v1683_v1 }
  0x20   : > { %1546 = vmatpush3.bf16.msra.mxu1 %v1641_v14 }
  0x21   : > { %1526 = vmatpush3.bf16.msra.mxu0 %v1644_v15  ;;  %1547 = vmatprep.subr.bf16.mxu1 %v1683_v1 }
  0x22   : > { %1527 = vmatprep.subr.bf16.mxu0 %v1683_v1 }
  0x24   : > { %1548 = vmatpush3.bf16.msra.mxu1 %v1643_v16 }
  0x25   : > { %1528 = vmatpush3.bf16.msra.mxu0 %v1646_v17  ;;  %1549 = vmatprep.subr.bf16.mxu1 %v1683_v1  ;;  %v619_v17 = vsub.s32 %v616_v51, %v453_v28  ;;  %v1663_v51 = vld [vmem:[%s1976_s5 + $0x38] sm:$0xff]  }
  0x26   : > { %1529 = vmatprep.subr.bf16.mxu0 %v1683_v1 }
  0x28   : > { %1550 = vmatpush3.bf16.msra.mxu1 %v1645_v18 }
  0x29   : > { %1530 = vmatpush3.bf16.msra.mxu0 %v1648_v19  ;;  %1551 = vmatprep.subr.bf16.mxu1 %v1683_v1 }
  0x2a   : > { %1531 = vmatprep.subr.bf16.mxu0 %v1683_v1 }
  0x2c   : > { %1552 = vmatpush3.bf16.msra.mxu1 %v1647_v20 }
  0x2d   : > { %1532 = vmatpush3.bf16.msra.mxu0 %v1650_v21  ;;  %1553 = vmatprep.subr.bf16.mxu1 %v1683_v1 }
  0x2e   : > { %1533 = vmatprep.subr.bf16.mxu0 %v1683_v1 }
  0x30   : > { %1554 = vmatpush3.bf16.msra.mxu1 %v1649_v22 }
  0x31   : > { %1555 = vmatprep.subr.bf16.mxu1 %v1683_v1  ;;  %1534 = vmatpush3.bf16.msra.mxu0 %v1653_v9  ;;  %v1410_v9 = vld [vmem:[%s1975_s4] ss:$0 sm:$0xff] }
  0x32   : > { %1535 = vmatprep.subr.bf16.mxu0 %v1683_v1 }
  0x34   : > { %1556 = vmatpush3.bf16.msra.mxu1 %v1651_v23 }
  0x35   : > { %1581 = vmatprep.subr.bf16.mxu1 %v1683_v1  ;;  %1536 = vmatpush3.bf16.msra.mxu0 %v1654_v25 }
  0x36   : > { %1561 = vmatprep.subr.bf16.mxu0 %v1683_v1 }
  0xe9   : > { %v368_v30 = vpop.f32.mrb[0].mxu0 }
  0xea   : > { %v448_v33 = vcombine.high %v368_v30, %v368_v30  ;;  %v455_v34 = vrot.slane %v368_v30, %v454_v29  ;;  %v441_v35 = vpop.f32.mrb[0].mxu1  ;;  %v1507_v36 = vpop.f32.mrb[1].mxu0 }
  0xeb   : > { %v506_v37 = vcombine.high %v441_v35, %v441_v35  ;;  %v513_v38 = vrot.slane %v441_v35, %v454_v29  ;;  %v1519_v40 = vpop.f32.mrb[1].mxu1  ;;  %v371_v41 = vpop.f32.mrb[2].mxu0  ;;  %v1652_v35 = vld [vmem:[%s1804_s13] sm:$0xff]  }
  0xec   : > { %v462_v42 = vrot.slane %v448_v33, %v454_v29  ;;  %v463_v43 = vcombine.high %v455_v34, %v455_v34  ;;  %v471_v44 = vrot.slane %v455_v34, %v454_v29  ;;  %v444_v45 = vpop.f32.mrb[2].mxu1  ;;  %v1508_v46 = vpop.f32.mrb[3].mxu0  ;;  %v1655_v41 = vld [vmem:[%s1974_s3 + $0x80] sm:$0xff]  }
  0xed   : > { %v520_v47 = vrot.slane %v506_v37, %v454_v29  ;;  %v521_v48 = vcombine.high %v513_v38, %v513_v38  ;;  %v529_v49 = vrot.slane %v513_v38, %v454_v29  ;;  %v1520_v50 = vpop.f32.mrb[3].mxu1  ;;  %v1658_v45 = vld [vmem:[%s1974_s3 + $0x98] sm:$0xff]   ;;  %v1659_v46 = vld [vmem:[%s1974_s3 + $0xa0] sm:$0xff]  }
  0xee   : > { %v464_v52 = vcombine.high %v462_v42, %v462_v42  ;;  %v478_v53 = vrot.slane %v462_v42, %v454_v29  ;;  %v485_v54 = vrot.slane %v463_v43, %v454_v29  ;;  %v493_v55 = vcombine.high %v471_v44, %v471_v44  ;;  %v1656_v43 = vld [vmem:[%s1974_s3 + $0x88] sm:$0xff]  }
  0xef   : > { %v522_v56 = vcombine.high %v520_v47, %v520_v47  ;;  %v536_v57 = vrot.slane %v520_v47, %v454_v29  ;;  %v543_v58 = vrot.slane %v521_v48, %v454_v29  ;;  %v551_v59 = vcombine.high %v529_v49, %v529_v49  ;;  %v1660_v47 = vld [vmem:[%s1974_s3 + $0xa8] sm:$0xff]   ;;  %v1661_v48 = vld [vmem:[%s1974_s3 + $0xb0] sm:$0xff]  }
  0xf0   : > { %v492_v60 = vrot.slane %v464_v52, %v454_v29  ;;  %v494_v61 = vcombine.high %v478_v53, %v478_v53  ;;  %v495_v62 = vcombine.high %v485_v54, %v485_v54  ;;  %v558_v63 = vrot.slane %v529_v49, %v557_v39  ;;  %v1662_v49 = vld [vmem:[%s1974_s3 + $0xb8] sm:$0xff]  }
  0xf1   : > { %v550_v0 = vrot.slane %v522_v56, %v454_v29  ;;  %v552_v2 = vcombine.high %v536_v57, %v536_v57  ;;  %v553_v3 = vcombine.high %v543_v58, %v543_v58  ;;  %v562_v4 = vrot.slane %v543_v58, %v557_v39  ;;  %v1664_v52 = vld [vmem:[%s1976_s5 + $0x1c] sm:$0xff]   ;;  %v1668_v56 = vld [vmem:[%s1976_s5 + $0x2c] sm:$0xff]  }
  0xf2   : > { %v496_v5 = vcombine.high %v492_v60, %v492_v60  ;;  %v566_v6 = vrot.slane %v551_v59, %v557_v39  ;;  %v574_v7 = vrot.slane %v536_v57, %v557_v39  ;;  %v596_v8 = vsel %vm595_vm2, %v471_v44, %v558_v63  ;;  %v1657_v44 = vld [vmem:[%s1974_s3 + $0x90] sm:$0xff]  }
  0xf3   : > { %v554_v10 = vcombine.high %v550_v0, %v550_v0  ;;  %v570_v11 = vrot.slane %v553_v3, %v557_v39  ;;  %v578_v12 = vrot.slane %v550_v0, %v557_v39  ;;  %v582_v13 = vrot.slane %v552_v2, %v557_v39  ;;  %v1669_v57 = vld [vmem:[%s1976_s5 + $0x50] ss:$0 sps:$4 sm:$0xff]   ;;  %v1670_v59 = vld [vmem:[%s1976_s5 + $0x34] ss:$0 sps:$4 sm:$0xff]  }
  0xf4   : > { %v597_v14 = vsel %vm595_vm2, %v485_v54, %v562_v4  ;;  %v598_v15 = vsel %vm595_vm2, %v493_v55, %v566_v6  ;;  %v600_v16 = vsel %vm595_vm2, %v478_v53, %v574_v7  ;;  %v1665_v53 = vld [vmem:[%s1976_s5 + $0x40] sm:$0xff]   ;;  %v1667_v55 = vld [vmem:[%s1976_s5 + $0x48] sm:$0xff]   ;;  %v1198_v58 = vsel %vm1051_vm3, %v1669_v57, 0 }
  0xf5   : > { %v586_v18 = vrot.slane %v554_v10, %v557_v39  ;;  %v599_v19 = vsel %vm595_vm2, %v495_v62, %v570_v11  ;;  %v601_v20 = vsel %vm595_vm2, %v492_v60, %v578_v12  ;;  %v602_v21 = vsel %vm595_vm2, %v494_v61, %v582_v13  ;;  %v1666_v54 = vld [vmem:[%s1976_s5 + $0x24] sm:$0xff]  }
  0xf6   : > { %v612_v22 = vcombine.low %v596_v8, %v597_v14  ;;  %v613_v23 = vcombine.low %v598_v15, %v599_v19  ;;  %v629_v24 = vcombine.low %v600_v16, %v601_v20  ;;  %v1053_v60 = vsel %vm1051_vm3, %v1670_v59, 0 }
  0xf7   : > { %v603_v26 = vsel %vm595_vm2, %v496_v5, %v586_v18 }
  0xf8   : > { %v620_v27 = vrot.slane %v612_v22, %v619_v17  ;;  %v627_v28 = vrot.slane %v613_v23, %v619_v17  ;;  %v630_v29 = vcombine.low %v602_v21, %v603_v26  ;;  %v637_v31 = vrot.slane %v629_v24, %v619_v17  ;;  %v1671_v24 = vld [vmem:[%s1976_s5] sm:$0xff]   ;;  %v1672_v26 = vld [vmem:[%s1976_s5 + $0x8] sm:$0xff]  }
  0xfa   : > { %v628_v30 = vcombine.low %v620_v27, %v627_v28  ;;  %v644_v32 = vrot.slane %v630_v29, %v619_v17  ;;  %v1673_v27 = vld [vmem:[%s1976_s5 + $0x10] sm:$0xff]   ;;  %v1674_v28 = vld [vmem:[%s1976_s5 + $0x18] ss:$0 sps:$4 sm:$0xff]  }
  0xfb   : > { %v1120_v29 = vsel %vm1051_vm3, %v1674_v28, 0 }
  0xfc   : > { %v645_v33 = vcombine.low %v637_v31, %v644_v32 }
  0xfe   : > { %v648_v34 = vpack.c.bf16 %v645_v33, %v628_v30 }
 0x100   : > { %657 = vrot.lane.b32.xlu0 %v648_v34, %s1687_s18 }
 0x172   : > { %v658_v36 = vpop.permute.xlu0 %657 }
 0x173   : > { %v661_v37 = vsel %vm330_vm1, %v1652_v35, %v658_v36 }
 0x174   : > { %v698_v38 = vshll.u32 %v661_v37, 16  ;;  %1558 = vmatmul.mubr.bf16.vlgmr.msra.gmra.mrb[4].mxu1 %v661_v37  ;;  %v696_v39 = vshrl.u32 %v661_v37, 16  ;;  %v899_v50 = vrot.slane %v661_v37, 1 }
 0x175   : > { %1589 = vmatprep.mubr.msk.bf16.mxu1 %vm1684_vm0, %v1683_v1  ;;  %1582 = vmatpush3.bf16.msra.mxu1 %v1664_v52 }
 0x176   : > { %v700_v40 = vrot.slane %v698_v38, 1  ;;  %1583 = vmatprep.subr.bf16.mxu1 %v1683_v1 }
 0x178   : > { %v701_v42 = vor.u32 %v700_v40, %v696_v39 }
 0x179   : > { %1584 = vmatpush3.bf16.msra.mxu1 %v1666_v54 }
 0x17a   : > { %1538 = vmatmul.mubr.bf16.vlgmr.msra.gmra.mrb[4].mxu0 %v701_v42  ;;  %1585 = vmatprep.subr.bf16.mxu1 %v1683_v1 }
 0x17b   : > { %1562 = vmatpush3.bf16.msra.mxu0 %v1655_v41  ;;  %1577 = vmatprep.mubr.msk.bf16.mxu0 %vm1684_vm0, %v1683_v1 }
 0x17c   : > { %1563 = vmatprep.subr.bf16.mxu0 %v1683_v1 }
 0x17d   : > { %1586 = vmatpush3.bf16.msra.mxu1 %v1668_v56 }
 0x17e   : > { %1587 = vmatprep.subr.bf16.mxu1 %v1683_v1 }
 0x17f   : > { %1564 = vmatpush3.bf16.msra.mxu0 %v1656_v43 }
 0x180   : > { %1565 = vmatprep.subr.bf16.mxu0 %v1683_v1 }
 0x181   : > { %1588 = vmatpush3.bf16.msra.mxu1 %v1053_v60 }
 0x182   : > { %1593 = vmatprep.subr.bf16.mxu1 %v1683_v1 }
 0x183   : > { %1566 = vmatpush3.bf16.msra.mxu0 %v1657_v44 }
 0x184   : > { %1567 = vmatprep.subr.bf16.mxu0 %v1683_v1 }
 0x187   : > { %1568 = vmatpush3.bf16.msra.mxu0 %v1658_v45 }
 0x188   : > { %1569 = vmatprep.subr.bf16.mxu0 %v1683_v1 }
 0x18b   : > { %1570 = vmatpush3.bf16.msra.mxu0 %v1659_v46 }
 0x18c   : > { %1571 = vmatprep.subr.bf16.mxu0 %v1683_v1 }
 0x18f   : > { %1572 = vmatpush3.bf16.msra.mxu0 %v1660_v47 }
 0x190   : > { %1573 = vmatprep.subr.bf16.mxu0 %v1683_v1 }
 0x193   : > { %1574 = vmatpush3.bf16.msra.mxu0 %v1661_v48 }
 0x194   : > { %1575 = vmatprep.subr.bf16.mxu0 %v1683_v1 }
 0x197   : > { %1576 = vmatpush3.bf16.msra.mxu0 %v1662_v49 }
 0x198   : > { %1605 = vmatprep.subr.bf16.mxu0 %v1683_v1 }
 0x19a   : > { %1578 = vmatmul.mubr.bf16.vlgmr.msra.gmra.mrb[8].mxu0 %v899_v50 }
 0x19b   : > { %1613 = vmatprep.mubr.msk.bf16.mxu0 %vm1684_vm0, %v1683_v1  ;;  %1606 = vmatpush3.bf16.msra.mxu0 %v1663_v51 }
 0x19c   : > { %1607 = vmatprep.subr.bf16.mxu0 %v1683_v1 }
 0x19f   : > { %1608 = vmatpush3.bf16.msra.mxu0 %v1665_v53 }
 0x1a0   : > { %1609 = vmatprep.subr.bf16.mxu0 %v1683_v1 }
 0x1a3   : > { %1610 = vmatpush3.bf16.msra.mxu0 %v1667_v55 }
 0x1a4   : > { %1611 = vmatprep.subr.bf16.mxu0 %v1683_v1 }
 0x1a7   : > { %1612 = vmatpush3.bf16.msra.mxu0 %v1198_v58 }
 0x247   : > { %v874_v61 = vpop.f32.mrb[4].mxu1 }
 0x248   : > { %v1559_v62 = vpop.f32.mrb[5].mxu1 }
 0x249   : > { %v877_v63 = vpop.f32.mrb[6].mxu1 }
 0x24a   : > { %v1560_v0 = vpop.f32.mrb[7].mxu1 }
 0x24d   : > { %v785_v2 = vpop.f32.mrb[4].mxu0 }
 0x24e   : > { %v875_v3 = vadd.f32 %v874_v61, %v785_v2  ;;  %v1539_v4 = vpop.f32.mrb[5].mxu0 }
 0x24f   : > { %v788_v5 = vpop.f32.mrb[6].mxu0 }
 0x250   : > { %v878_v6 = vadd.f32 %v877_v63, %v788_v5  ;;  %v1540_v7 = vpop.f32.mrb[7].mxu0 }
 0x26d   : > { %v983_v8 = vpop.f32.mrb[8].mxu0 }
 0x26e   : > { %v990_v10 = vadd.f32 %v983_v8, %v875_v3  ;;  %v1579_v11 = vpop.f32.mrb[9].mxu0 }
 0x26f   : > { %v986_v12 = vpop.f32.mrb[10].mxu0 }
 0x270   : > { %v999_v13 = vadd.f32 %v1410_v9, %v990_v10  ;;  %v991_v14 = vadd.f32 %v986_v12, %v878_v6  ;;  %v1580_v15 = vpop.f32.mrb[11].mxu0 }
 0x272   : > { %v1000_v16 = vadd.f32 %v1410_v9, %v991_v14  ;;  %v1001_v17 = vmax.f32 %v999_v13, 0.0 }
 0x274   : > { %v1002_v18 = vmax.f32 %v1000_v16, 0.0 }
 0x276   : > { %v1003_v19 = vpack.c.bf16 %v1002_v18, %v1001_v17 }
 0x278   : > { %v1022_v20 = vshll.u32 %v1003_v19, 16  ;;  %v1172_v21 = vrot.slane %v1003_v19, 1  ;;  %v1020_v22 = vshrl.u32 %v1003_v19, 16 }
 0x27a   : > { %v1024_v23 = vrot.slane %v1022_v20, 1  ;;  %1614 = vmatmul.mubr.msk.bf16.vlgmr.msra.gmra.mrb[12].mxu0 %vm1047_vm4, %v1172_v21 }
 0x27c   : > { %v1025_v25 = vor.u32 %v1024_v23, %v1020_v22 }
 0x27e   : > { %1590 = vmatmul.mubr.msk.bf16.vlgmr.msra.gmra.mrb[8].mxu1 %vm1047_vm4, %v1025_v25 }
 0x27f   : > { %1594 = vmatpush3.bf16.msra.mxu1 %v1671_v24  ;;  %1601 = vmatprep.mubr.msk.bf16.mxu1 %vm1684_vm0, %v1683_v1 }
 0x280   : > { %1595 = vmatprep.subr.bf16.mxu1 %v1683_v1 }
 0x283   : > { %1596 = vmatpush3.bf16.msra.mxu1 %v1672_v26 }
 0x284   : > { %1597 = vmatprep.subr.bf16.mxu1 %v1683_v1 }
 0x287   : > { %1598 = vmatpush3.bf16.msra.mxu1 %v1673_v27 }
 0x288   : > { %1599 = vmatprep.subr.bf16.mxu1 %v1683_v1  ;;  %v1440_v1 = vld [vmem:[%s1977_s6] ss:$0 sm:$0xff] }
 0x28b   : > { %1600 = vmatpush3.bf16.msra.mxu1 %v1120_v29 }
 0x28e   : > { %1602 = vmatmul.mubr.msk.bf16.vlgmr.msra.gmra.mrb[12].mxu1 %vm1047_vm4, %v1003_v19 }
 0x34d   : > { %v1234_v30 = vpop.f32.mrb[12].mxu0 }
 0x34e   : > { %v1615_v31 = vpop.f32.mrb[13].mxu0 }
 0x34f   : > { %v1237_v32 = vpop.f32.mrb[14].mxu0 }
 0x350   : > { %v1616_v33 = vpop.f32.mrb[15].mxu0 }
 0x351   : > { %v1089_v34 = vpop.f32.mrb[8].mxu1 }
 0x352   : > { %v1591_v35 = vpop.f32.mrb[9].mxu1 }
 0x353   : > { %v1092_v36 = vpop.f32.mrb[10].mxu1 }
 0x354   : > { %v1592_v37 = vpop.f32.mrb[11].mxu1 }
 0x361   : > { %v1156_v38 = vpop.f32.mrb[12].mxu1 }
 0x362   : > { %v1157_v39 = vadd.f32 %v1156_v38, %v1089_v34  ;;  %v1603_v40 = vpop.f32.mrb[13].mxu1 }
 0x363   : > { %v1159_v41 = vpop.f32.mrb[14].mxu1 }
 0x364   : > { %v1241_v42 = vadd.f32 %v1234_v30, %v1157_v39  ;;  %v1160_v43 = vadd.f32 %v1159_v41, %v1092_v36  ;;  %v1604_v44 = vpop.f32.mrb[15].mxu1 }
 0x366   : > { %v1250_v45 = vadd.f32 %v1440_v1, %v1241_v42  ;;  %v1242_v46 = vadd.f32 %v1237_v32, %v1160_v43 }
 0x368   : > { %v1252_v47 = vmax.f32 %v1250_v45, 0.0  ;;  %v1251_v48 = vadd.f32 %v1440_v1, %v1242_v46 }
 0x36a   : > { %1255 = vst.msk [vmem:[%s295_s23] sm:$0xff] %vm1254_vm5, %v1252_v47  ;;  %v1253_v49 = vmax.f32 %v1251_v48, 0.0 }
 0x36c   : > { %1257 = vst.msk [vmem:[%s295_s23 + $0x8] sm:$0xf] %vm1256_vm6, %v1253_v49 }
 0x36d PF: > { %s17_s24 = sadd.s32 1, %s1681_s24  }
 0x36e   : > { %p14_p4 = scmp.ge.s32.totalorder %s17_s24, 4  }
 0x370   :  { %16 = sbr.rel (!%p14_p4) target bundleno = 1 (0x1), region = 86 }

</bundles_post_ra>
